<compile_context>
chip_gen: v7x
topology: tpu7x:2x2x1
jax: 0.10.0
libtpu: 0.0.40
codegen_flags: <defaults>
</compile_context>

<pallas_src>
import numpy as np
import jax
import jax.numpy as jnp
from jax.experimental import pallas as pl
from jax.experimental.pallas import tpu as pltpu


def _round_up(x, m):
    return ((x + m - 1) // m) * m


# ---------------------------------------------------------------------------
# Pallas kernel: one (TM, TN) tile of the pairwise L-inf cost matrix.
#   dgm1 arrives as (N1p, 2) -> block (TM, 2): births/deaths as (TM, 1) cols.
#   dgm2 arrives as (2, N2p) -> block (2, TN): births/deaths as (1, TN) rows,
#   so N2 sits on the lane axis and the (TM, TN) store is unmasked/lane-dense.
# ---------------------------------------------------------------------------
def _cost_kernel(d1_ref, d2t_ref, cost_ref):
    b1 = d1_ref[:, 0:1]            # (TM, 1) births of dgm1
    e1 = d1_ref[:, 1:2]            # (TM, 1) deaths of dgm1
    b2 = d2t_ref[0:1, :]           # (1, TN) births of dgm2
    e2 = d2t_ref[1:2, :]           # (1, TN) deaths of dgm2
    cost_ref[...] = jnp.maximum(jnp.abs(b1 - b2), jnp.abs(e1 - e2))


def pairwise_bottleneck_costs(dgm1, dgm2, tm=512, tn=1024):
    """(N1, N2) pairwise L-inf cost matrix between two persistence diagrams."""
    n1 = int(dgm1.shape[0])
    n2 = int(dgm2.shape[0])
    # Shrink tiles to the (8,128)-aligned problem size for small diagrams.
    # Default (512, 1024) f32 tiles = 2 MiB each, so double-buffered VMEM use
    # stays far below the scoped limit on every chip (16 MiB default on v5e,
    # 64 MiB physical on v7x). v6e has headroom for (1024, 2048) if desired.
    tm = min(tm, _round_up(max(n1, 1), 8))
    tn = min(tn, _round_up(max(n2, 1), 128))
    n1p = _round_up(max(n1, 1), tm)
    n2p = _round_up(max(n2, 1), tn)

    d1p = jnp.pad(jnp.asarray(dgm1, jnp.float32), ((0, n1p - n1), (0, 0)))
    d2tp = jnp.pad(jnp.asarray(dgm2, jnp.float32).T, ((0, 0), (0, n2p - n2)))

    cost = pl.pallas_call(
        _cost_kernel,
        out_shape=jax.ShapeDtypeStruct((n1p, n2p), jnp.float32),
        grid=(n1p // tm, n2p // tn),
        in_specs=[
            pl.BlockSpec((tm, 2), lambda i, j: (i, 0)),
            pl.BlockSpec((2, tn), lambda i, j: (0, j)),
        ],
        out_specs=pl.BlockSpec((tm, tn), lambda i, j: (i, j)),
        compiler_params=pltpu.CompilerParams(
            dimension_semantics=("parallel", "parallel")),
    )(d1p, d2tp)
    return cost[:n1, :n2]


# ---------------------------------------------------------------------------
# Host-side exact bottleneck matching (stand-in for hera.bottleneck_dist with
# return_bottleneck_edge=True), run over the Pallas-computed cost matrix.
# ---------------------------------------------------------------------------
def _bottleneck_matching(cost, diag1, diag2):
    n1, n2 = cost.shape
    N = n1 + n2  # augmented bipartite graph: real points + diagonal copies
    if N == 0:
        return 0.0, (-1, -1)

    def edge_cost(u, v):
        if u < n1 and v < n2:
            return float(cost[u, v])
        if u < n1:
            return float(diag1[u])
        if v < n2:
            return float(diag2[v])
        return 0.0

    def perfect_matching(t):
        match_r = [-1] * N

        def try_kuhn(u0):
            # Iterative augmenting-path DFS (no Python recursion-depth limit).
            seen = [False] * N
            stack = [[u0, 0, -1]]          # [left vertex, next v, chosen v]
            while stack:
                frame = stack[-1]
                u = frame[0]
                descended = False
                while frame[1] < N:
                    v = frame[1]
                    frame[1] += 1
                    if not seen[v] and edge_cost(u, v) <= t:
                        seen[v] = True
                        frame[2] = v
                        if match_r[v] == -1:
                            for fu, _, fv in stack:   # flip matches on path
                                match_r[fv] = fu
                            return True
                        stack.append([match_r[v], 0, -1])
                        descended = True
                        break
                if not descended:
                    stack.pop()
            return False

        for u in range(N):
            if not try_kuhn(u):
                return None
        return match_r

    cands = np.unique(np.concatenate(
        [np.asarray(cost, np.float32).reshape(-1),
         np.asarray(diag1, np.float32).reshape(-1),
         np.asarray(diag2, np.float32).reshape(-1),
         np.zeros(1, dtype=np.float32)]))
    lo, hi = 0, len(cands) - 1
    best = None
    while lo <= hi:
        mid = (lo + hi) // 2
        m = perfect_matching(float(cands[mid]))
        if m is not None:
            best = (float(cands[mid]), m)
            hi = mid - 1
        else:
            lo = mid + 1
    dist, match_r = best

    # Bottleneck edge = matched pair achieving the bottleneck cost.
    best_edge, best_c = (-1, -1), -1.0
    for v in range(N):
        u = match_r[v]
        c = edge_cost(u, v)
        if c > best_c:
            best_c = c
            best_edge = (u if u < n1 else -1, v if v < n2 else -1)
    return dist, best_edge


# ---------------------------------------------------------------------------
# Module-equivalent forward.
# ---------------------------------------------------------------------------
def bottleneck_layer_hera(dgm1, dgm2, zero_out=True):
    dgm1 = jnp.asarray(dgm1, jnp.float32)
    dgm2 = jnp.asarray(dgm2, jnp.float32)
    # NOTE: matches the reference module exactly: zero-length bars are removed
    # only when zero_out is False.
    if not zero_out:
        dgm1 = dgm1[dgm1[:, 0] != dgm1[:, 1]]
        dgm2 = dgm2[dgm2[:, 0] != dgm2[:, 1]]

    # Pallas: the O(N1*N2) pairwise L-inf cost matrix.
    cost = pairwise_bottleneck_costs(dgm1, dgm2)
    # O(N) diagonal (half-persistence) costs: trivial, plain jnp.
    diag1 = (dgm1[:, 1] - dgm1[:, 0]) * 0.5
    diag2 = (dgm2[:, 1] - dgm2[:, 0]) * 0.5

    # TODO(synk): hera's geometric Hopcroft-Karp matching has no clean Pallas
    # equivalent; exact combinatorial matching runs on host (single
    # device->host pull of each Pallas-computed array).
    _, (u, v) = _bottleneck_matching(np.asarray(cost),
                                     np.asarray(diag1),
                                     np.asarray(diag2))

    # Final differentiable value (plain jnp; a (1,2)->(1,1) kernel is pure
    # launch + DMA overhead).
    if u < 0 and v < 0:      # degenerate diagonal-to-diagonal bottleneck edge
        return jnp.float32(0.0)
    if u < 0:                # dgm1-side endpoint is a diagonal projection
        return (dgm2[v, 1] - dgm2[v, 0]) * 0.5
    if v < 0:                # dgm2-side endpoint is a diagonal projection
        return (dgm1[u, 1] - dgm1[u, 0]) * 0.5
    return jnp.max(jnp.abs(dgm1[u] - dgm2[v]))


if __name__ == "__main__":
    key = jax.random.PRNGKey(0)
    k1, k2, k3, k4 = jax.random.split(key, 4)
    n1, n2 = 8, 6
    # Build valid persistence diagrams: death >= birth.
    b1 = jax.random.uniform(k1, (n1, 1), jnp.float32)
    p1 = jax.random.uniform(k2, (n1, 1), jnp.float32)
    dgm1 = jnp.concatenate([b1, b1 + p1], axis=1)
    b2 = jax.random.uniform(k3, (n2, 1), jnp.float32)
    p2 = jax.random.uniform(k4, (n2, 1), jnp.float32)
    dgm2 = jnp.concatenate([b2, b2 + p2], axis=1)

    result = bottleneck_layer_hera(dgm1, dgm2, zero_out=True)
    jax.block_until_ready(result)
    print("KERNEL_OK")
</pallas_src>

<mosaic_0001>
module attributes {stable_mosaic.version = 11 : i64} {
  func.func @_cost_kernel(%arg0: i32, %arg1: i32, %arg2: memref<8x2xf32, #tpu.memory_space<vmem>>, %arg3: memref<2x128xf32, #tpu.memory_space<vmem>>, %arg4: memref<8x128xf32, #tpu.memory_space<vmem>>) attributes {dimension_semantics = [#tpu.dimension_semantics<parallel>, #tpu.dimension_semantics<parallel>], iteration_bounds = array<i64: 1, 1>, scalar_prefetch = 0 : i64, scratch_operands = 0 : i64, tpu.core_type = #tpu.core_type<tc>, window_params = [{transform_indices = @transform_0, window_bounds = array<i64: 8, 2>}, {transform_indices = @transform_1, window_bounds = array<i64: 2, 128>}, {transform_indices = @transform_2, window_bounds = array<i64: 8, 128>}]} {
    %c0 = arith.constant 0 : index
    %c0_0 = arith.constant 0 : index
    %0 = vector.load %arg2[%c0, %c0_0] : memref<8x2xf32, #tpu.memory_space<vmem>>, vector<8x1xf32>
    %c0_1 = arith.constant 0 : index
    %c1 = arith.constant 1 : index
    %1 = vector.load %arg2[%c0_1, %c1] : memref<8x2xf32, #tpu.memory_space<vmem>>, vector<8x1xf32>
    %c0_2 = arith.constant 0 : index
    %c0_3 = arith.constant 0 : index
    %2 = vector.load %arg3[%c0_2, %c0_3] : memref<2x128xf32, #tpu.memory_space<vmem>>, vector<1x128xf32>
    %c1_4 = arith.constant 1 : index
    %c0_5 = arith.constant 0 : index
    %3 = vector.load %arg3[%c1_4, %c0_5] : memref<2x128xf32, #tpu.memory_space<vmem>>, vector<1x128xf32>
    %4 = vector.broadcast %0 : vector<8x1xf32> to vector<8x128xf32>
    %5 = vector.broadcast %2 : vector<1x128xf32> to vector<8x128xf32>
    %6 = arith.subf %4, %5 : vector<8x128xf32>
    %7 = math.absf %6 : vector<8x128xf32>
    %8 = vector.broadcast %1 : vector<8x1xf32> to vector<8x128xf32>
    %9 = vector.broadcast %3 : vector<1x128xf32> to vector<8x128xf32>
    %10 = arith.subf %8, %9 : vector<8x128xf32>
    %11 = math.absf %10 : vector<8x128xf32>
    %12 = arith.maximumf %7, %11 : vector<8x128xf32>
    %c0_6 = arith.constant 0 : index
    %c0_7 = arith.constant 0 : index
    %13 = vector.load %arg4[%c0_6, %c0_7] : memref<8x128xf32, #tpu.memory_space<vmem>>, vector<8x128xf32>
    tpu.vector_store %arg4[%c0_6, %c0_7], %12 {strides = array<i32>} : memref<8x128xf32, #tpu.memory_space<vmem>>, vector<8x128xf32>,
    return
  }
  func.func @transform_0(%arg0: i32, %arg1: i32) -> (i32, i32) {
    %c0_i32 = arith.constant 0 : i32
    %c0_i32_0 = arith.constant 0 : i32
    return %arg0, %c0_i32 : i32, i32
  }
  func.func @transform_1(%arg0: i32, %arg1: i32) -> (i32, i32) {
    %c0_i32 = arith.constant 0 : i32
    %c0_i32_0 = arith.constant 0 : i32
    return %c0_i32, %arg1 : i32, i32
  }
  func.func @transform_2(%arg0: i32, %arg1: i32) -> (i32, i32) {
    %c0_i32 = arith.constant 0 : i32
    return %arg0, %arg1 : i32, i32
  }
}

</mosaic_0001>

<bundles_post_ra>
// kernel: tpu_custom_call.1
= control target key start
LH: loop header
LB: loop body
LE: loop exit
PB: predicated region body
PF: predicated region fallthrough
CT: control target
= control target key end

     0   :  { %v83_v1 = vmov 0   ;;  %s122_s0 = inlined_call_operand.vmem [shape: f32[8,2], index: 0, kind: input, shape index: {}]   ;;  %s123_s1 = inlined_call_operand.vmem [shape: f32[2,128], index: 1, kind: input, shape index: {}]   ;;  %s124_s2 = inlined_call_operand.hbm [shape: f32[8,128], index: 2, kind: output, shape index: {}]  }
   0x1   :  { %v12_v0 = vld [vmem:[%s122_s0] sm:$0xff]  ;;  %57 = vset.pattern.permute.xlu0 %v83_v1 }
   0x2   :  { %7 = vsyncpa [#allocation3], 0  ;;  %17 = vperm.xlu0 %57, %v12_v0   ;;  %v84_v2 = vmov 1   ;;  %v52_v4 = vld [vmem:[%s123_s1] ss:$0 sm:$0xff]  ;;  %s85_s0 = smov [#allocation2]  }
   0x3   :  { %v53_v5 = vld [vmem:[%s123_s1 + $0x1] ss:$0 sm:$0xff]  ;;  %s44_s15 = sshll.u32 %s85_s0, 4  ;;  %s45_s15 = int_to_ptr.vmem [resolvable:$true] %s44_s15 }
   0x4   :  { %s59_s16 = scalar_lea.vmem %s45_s15, 128  ;;  %p64_p1 = scmp.lt.s32.totalorder %s45_s15, %s45_s15 }
   0x5   :  { %p60_p0 = scmp.ne.s32.totalorder %s45_s15, %s59_s16  ;;  %p65_p2 = scmp.lt.s32.totalorder %s59_s16, %s59_s16 }
   0x6   :  { %58 = vset.pattern.permute.xlu0 %v84_v2 }
   0x7   :  { %27 = vperm.xlu0 %58, %v12_v0   ;;  %p66_p3 = por %p65_p2, %p64_p1 }
   0x9   :  { %p67_p4 = pnand %p66_p3, %p60_p0 }
  0x81   :  { %v18_v3 = vpop.permute.xlu0 %17 }
  0x82   :  { %v24_v6 = vsub.f32 %v18_v3, %v52_v4 }
  0x84   :  { %v25_v9 = vand.u32 2147483647, %v24_v6 }
  0x86   :  { %v28_v7 = vpop.permute.xlu0 %27 }
  0x87   :  { %v34_v8 = vsub.f32 %v28_v7, %v53_v5 }
  0x89   :  { %v35_v10 = vand.u32 2147483647, %v34_v8 }
  0x8b   :  { %v36_v11 = vmax.f32.f32 %v25_v9, %v35_v10 }
  0x8d   :  { %37 = vst [vmem:[#allocation2] sm:$0xff] %v36_v11 }
  0x8e   :  { %70 = shalt.err (!%p67_p4)
}
  0x8f   :  { %s71_s1 = scalar_lea.hbm %s124_s2, 128 }
  0x90   :  { %p72_p5 = scmp.ne.s32.totalorder %s124_s2, %s71_s1  ;;  %p75_p6 = scmp.lt.u32.totalorder %s71_s1, %s124_s2 }
  0x92   :  { %p77_p7 = pnand %p75_p6, %p72_p5 }
  0x94   :  { %80 = shalt.err (!%p77_p7)
}
  0x95   :  { %47 = dma.vmem_to_hbm [thread:$0]  %s45_s15, 128, %s124_s2, [#allocation3]  }
  0x96   :  { %81 = dma.done.wait [#allocation3], 128  }
  0x97   :  { %82 = vsyncadd [#allocation3], 4294967168 }
  0x98   :  { %51 = vsyncpa [#allocation3], 1 }

</bundles_post_ra>
